<compile_context>
chip_gen: v7x
topology: tpu7x:2x2x1
jax: 0.10.0
libtpu: 0.0.40
codegen_flags: <defaults>
</compile_context>

<pallas_src>
import functools

import jax
import jax.numpy as jnp
from jax.experimental import pallas as pl
from jax.experimental.pallas import tpu as pltpu


def _round_up(x, m):
    return ((x + m - 1) // m) * m


def _padded_bytes(rows, cols, itemsize=4):
    """f32 VMEM footprint of a (rows, cols) buffer after (8,128) tiling."""
    return _round_up(max(rows, 1), 8) * _round_up(max(cols, 1), 128) * itemsize


def _tabular_netd_kernel(*refs, sigma, has_noise):
    if has_noise:
        (xr_ref, xl_ref, nz_ref,
         w1r_ref, w1l_ref, b1_ref, w2_ref, b2_ref, out_ref) = refs
    else:
        (xr_ref, xl_ref,
         w1r_ref, w1l_ref, b1_ref, w2_ref, b2_ref, out_ref) = refs
        nz_ref = None

    xr = xr_ref[...]                                    # (out_dim, TB), lane-dense
    if has_noise:
        xr = xr + jnp.float32(sigma) * nz_ref[...]      # GaussianNoise

    # fc1 without a concatenate, transposed so batch rides the lane axis:
    #   hT = W1[:, :out_dim] @ rowT + W1[:, out_dim:] @ labelsT + b1
    h = jnp.dot(w1r_ref[...], xr, preferred_element_type=jnp.float32)
    h = h + jnp.dot(w1l_ref[...], xl_ref[...],
                    preferred_element_type=jnp.float32)
    h = h + b1_ref[...]                                 # (H,1) broadcast over lanes
    h = jnp.maximum(h, jnp.float32(0.2) * h)            # LeakyReLU(0.2)

    # Output layer: (1,H) @ (H,TB) -> lane-dense (1,TB), then Sigmoid.
    logits = jnp.dot(w2_ref[...], h, preferred_element_type=jnp.float32)
    out_ref[...] = jax.nn.sigmoid(logits + b2_ref[...])


def tabular_netd_forward(row, labels, params, *, sigma, noise=None, key=None,
                         block_b=4096):
    """TabularNetD forward.

    params = (w1, b1, w2, b2) in torch layout:
      w1: (H, out_dim + nc), b1: (H,), w2: (1, H), b2: (1,)
    If sigma != 0, `noise` (B, out_dim) is used as the standard-normal draw;
    if it is None it is generated from `key` with jax.random.normal.
    Returns sigmoid probabilities of shape (B, 1).
    """
    w1, b1, w2, b2 = params
    B, out_dim = row.shape
    nc = labels.shape[1]
    H = w1.shape[0]
    assert w1.shape == (H, out_dim + nc)

    has_noise = float(sigma) != 0.0
    if has_noise and noise is None:
        if key is None:
            raise ValueError("sigma != 0 requires either `noise` or `key`")
        # TODO(synk): noise is drawn with jax.random in the wrapper because the
        # on-chip pltpu PRNG (prng_seed) is unavailable under interpret lowering;
        # it therefore cannot bit-match torch.randn's stream (same distribution).
        noise = jax.random.normal(key, (B, out_dim), dtype=jnp.float32)

    # --- batch tiling -------------------------------------------------------
    # Batch is the lane (last) axis of every blocked array, so tiles must be
    # multiples of 128.  Cap at 8192 (keeps padded VMEM well inside v7x's
    # 64 MiB); prefer >= 2 grid steps so v7x megacore can split the batch.
    block_b = max(128, (min(int(block_b), 8192) // 128) * 128)
    b_pad = _round_up(B, 128)
    if b_pad > block_b:
        b_pad = _round_up(b_pad, block_b)
    elif b_pad >= 256:
        block_b = _round_up(-(-b_pad // 2), 128)
        b_pad = _round_up(b_pad, block_b)
    else:
        block_b = b_pad
    num_tiles = b_pad // block_b

    # --- wrapper-side data prep (cheap XLA ops) -----------------------------
    pad_b = ((0, 0), (0, b_pad - B))
    rowT = jnp.pad(row.astype(jnp.float32).T, pad_b)        # (out_dim, b_pad)
    labT = jnp.pad(labels.astype(jnp.float32).T, pad_b)     # (nc, b_pad)
    inputs = [rowT, labT]
    if has_noise:
        inputs.append(jnp.pad(noise.astype(jnp.float32).T, pad_b))

    w1f = w1.astype(jnp.float32)
    w1r = w1f[:, :out_dim]                                    # (H, out_dim)
    w1l = w1f[:, out_dim:]                                    # (H, nc)
    b1c = b1.reshape(H, 1).astype(jnp.float32)
    w2r = w2.reshape(1, H).astype(jnp.float32)
    b2r = b2.reshape(1, 1).astype(jnp.float32)
    inputs += [w1r, w1l, b1c, w2r, b2r]

    # --- specs --------------------------------------------------------------
    batch_map = lambda i: (0, i)
    const_map = lambda i: (0, 0)
    in_specs = [
        pl.BlockSpec((out_dim, block_b), batch_map),          # rowT tile
        pl.BlockSpec((nc, block_b), batch_map),               # labelsT tile
    ]
    if has_noise:
        in_specs.append(pl.BlockSpec((out_dim, block_b), batch_map))
    in_specs += [
        pl.BlockSpec((H, out_dim), const_map),                # W1 (row part)
        pl.BlockSpec((H, nc), const_map),                     # W1 (label part)
        pl.BlockSpec((H, 1), const_map),                      # b1
        pl.BlockSpec((1, H), const_map),                      # W2
        pl.BlockSpec((1, 1), const_map),                      # b2
    ]
    out_spec = pl.BlockSpec((1, block_b), batch_map)
    out_shape = jax.ShapeDtypeStruct((1, b_pad), jnp.float32)

    # --- VMEM budget (lane/sublane-padding aware) ---------------------------
    tile_bytes = (_padded_bytes(out_dim, block_b) + _padded_bytes(nc, block_b)
                  + (_padded_bytes(out_dim, block_b) if has_noise else 0)
                  + _padded_bytes(1, block_b))
    weight_bytes = (_padded_bytes(H, out_dim) + _padded_bytes(H, nc)
                    + _padded_bytes(H, 1) + _padded_bytes(1, H)
                    + _padded_bytes(1, 1))
    interm_bytes = 2 * _padded_bytes(H, block_b) + _padded_bytes(out_dim, block_b)
    vmem_limit = int(min(48 * 1024 * 1024,
                         max(16 * 1024 * 1024,
                             2 * tile_bytes + 2 * weight_bytes
                             + interm_bytes + (4 << 20))))

    K = out_dim + nc
    cost = pl.CostEstimate(
        flops=int(2 * b_pad * K * H + 2 * b_pad * H + 4 * b_pad * (H + out_dim)),
        transcendentals=int(b_pad),
        bytes_accessed=int(4 * (b_pad * (K + (out_dim if has_noise else 0) + 1)
                                + K * H + 2 * H + 1)),
    )

    kernel = functools.partial(_tabular_netd_kernel,
                               sigma=float(sigma), has_noise=has_noise)

    out = pl.pallas_call(
        kernel,
        out_shape=out_shape,
        grid_spec=pltpu.PrefetchScalarGridSpec(
            num_scalar_prefetch=0,
            grid=(num_tiles,),
            in_specs=in_specs,
            out_specs=out_spec,
        ),
        compiler_params=pltpu.CompilerParams(
            dimension_semantics=("parallel",),
            vmem_limit_bytes=vmem_limit,
        ),
        cost_estimate=cost,
    )(*inputs)

    return out[0, :B].reshape(B, 1)


def init_params(key, out_dim, nc, H):
    """Synthetic DCGAN-style init, torch layout: weight ~ N(0, 0.02)."""
    k1, k2, k3, k4 = jax.random.split(key, 4)
    w1 = 0.02 * jax.random.normal(k1, (H, out_dim + nc), dtype=jnp.float32)
    b1 = 0.01 * jax.random.normal(k2, (H,), dtype=jnp.float32)
    w2 = 0.02 * jax.random.normal(k3, (1, H), dtype=jnp.float32)
    b2 = 0.01 * jax.random.normal(k4, (1,), dtype=jnp.float32)
    return w1, b1, w2, b2


def reference_forward(row, labels, noise, w1, b1, w2, b2, sigma):
    """Pure-JAX replica of the PyTorch forward (torch-layout weights)."""
    x = jnp.concatenate([row + sigma * noise, labels], axis=1)
    h = x @ w1.T + b1
    h = jnp.where(h > 0, h, 0.2 * h)
    return jax.nn.sigmoid(h @ w2.T + b2)


if __name__ == "__main__":
    out_dim, nc, H = 16, 4, 32
    sigma = 0.05

    key = jax.random.PRNGKey(0)
    k_row, k_lab, k_par, k_nz = jax.random.split(key, 4)

    B = 300
    row = jax.random.normal(k_row, (B, out_dim), dtype=jnp.float32)
    labels = jax.nn.one_hot(
        jax.random.randint(k_lab, (B,), 0, nc), nc, dtype=jnp.float32)
    params = init_params(k_par, out_dim, nc, H)
    noise = jax.random.normal(k_nz, (B, out_dim), dtype=jnp.float32)

    # Case 1: multi-tile grid (B=300, block_b=128 -> 3 tiles), with noise,
    # batch-tail padding, lane-dense (1, block_b) output tiles.
    out = tabular_netd_forward(row, labels, params, sigma=sigma, noise=noise,
                               block_b=128)
    out = jax.block_until_ready(out)
    ref = reference_forward(row, labels, noise, *params, sigma)
    assert out.shape == (B, 1)
    assert bool(jnp.all(jnp.isfinite(out)))
    assert bool(jnp.all((out > 0.0) & (out < 1.0)))
    assert jnp.allclose(out, ref, atol=1e-5), float(jnp.max(jnp.abs(out - ref)))

    # Case 2: default tile size -> tile split for a 2-step "parallel" grid.
    out_b = tabular_netd_forward(row, labels, params, sigma=sigma, noise=noise)
    out_b = jax.block_until_ready(out_b)
    assert jnp.allclose(out_b, ref, atol=1e-5), \
        float(jnp.max(jnp.abs(out_b - ref)))

    # Case 3: noise-free path (sigma=0), tiny single-tile batch, exact check.
    B2 = 8
    out2 = tabular_netd_forward(row[:B2], labels[:B2], params, sigma=0.0)
    out2 = jax.block_until_ready(out2)
    ref2 = reference_forward(row[:B2], labels[:B2],
                             jnp.zeros((B2, out_dim), jnp.float32),
                             *params, 0.0)
    assert out2.shape == (B2, 1)
    assert jnp.allclose(out2, ref2, atol=1e-5), \
        float(jnp.max(jnp.abs(out2 - ref2)))

    print("KERNEL_OK")
</pallas_src>

<mosaic_0001>
module attributes {stable_mosaic.version = 11 : i64} {
  func.func @_tabular_netd_kernel(%arg0: i32, %arg1: memref<16x128xf32, #tpu.memory_space<vmem>>, %arg2: memref<4x128xf32, #tpu.memory_space<vmem>>, %arg3: memref<16x128xf32, #tpu.memory_space<vmem>>, %arg4: memref<32x16xf32, #tpu.memory_space<vmem>>, %arg5: memref<32x4xf32, #tpu.memory_space<vmem>>, %arg6: memref<32x1xf32, #tpu.memory_space<vmem>>, %arg7: memref<1x32xf32, #tpu.memory_space<vmem>>, %arg8: memref<1x1xf32, #tpu.memory_space<vmem>>, %arg9: memref<1x128xf32, #tpu.memory_space<vmem>>) attributes {dimension_semantics = [#tpu.dimension_semantics<parallel>], iteration_bounds = array<i64: 3>, scalar_prefetch = 0 : i64, scratch_operands = 0 : i64, tpu.core_type = #tpu.core_type<tc>, window_params = [{transform_indices = @transform_0, window_bounds = array<i64: 16, 128>}, {transform_indices = @transform_1, window_bounds = array<i64: 4, 128>}, {transform_indices = @transform_2, window_bounds = array<i64: 16, 128>}, {pipeline_mode = #tpu.pipeline_mode<synchronous>, transform_indices = @transform_3, window_bounds = array<i64: 32, 16>}, {pipeline_mode = #tpu.pipeline_mode<synchronous>, transform_indices = @transform_4, window_bounds = array<i64: 32, 4>}, {pipeline_mode = #tpu.pipeline_mode<synchronous>, transform_indices = @transform_5, window_bounds = array<i64: 32, 1>}, {pipeline_mode = #tpu.pipeline_mode<synchronous>, transform_indices = @transform_6, window_bounds = array<i64: 1, 32>}, {pipeline_mode = #tpu.pipeline_mode<synchronous>, transform_indices = @transform_7, window_bounds = array<i64: 1, 1>}, {transform_indices = @transform_8, window_bounds = array<i64: 1, 128>}]} {
    %c0 = arith.constant 0 : index
    %c0_0 = arith.constant 0 : index
    %0 = vector.load %arg1[%c0, %c0_0] : memref<16x128xf32, #tpu.memory_space<vmem>>, vector<16x128xf32>
    %c0_1 = arith.constant 0 : index
    %c0_2 = arith.constant 0 : index
    %1 = vector.load %arg3[%c0_1, %c0_2] : memref<16x128xf32, #tpu.memory_space<vmem>>, vector<16x128xf32>
    %cst = arith.constant 5.000000e-02 : f32
    %2 = vector.broadcast %cst : f32 to vector<16x128xf32>
    %3 = arith.mulf %2, %1 : vector<16x128xf32>
    %4 = arith.addf %0, %3 : vector<16x128xf32>
    %c0_3 = arith.constant 0 : index
    %c0_4 = arith.constant 0 : index
    %5 = vector.load %arg4[%c0_3, %c0_4] : memref<32x16xf32, #tpu.memory_space<vmem>>, vector<32x16xf32>
    %cst_5 = arith.constant dense<0.000000e+00> : vector<32x128xf32>
    %6 = tpu.matmul %5, %4, %cst_5 {dimension_numbers = #tpu.dot_dimension_numbers<[1], [0], [0], [1], [0, 0, 1, 1], [], []>} : vector<32x16xf32>, vector<16x128xf32>, vector<32x128xf32> -> vector<32x128xf32>
    %c0_6 = arith.constant 0 : index
    %c0_7 = arith.constant 0 : index
    %7 = vector.load %arg5[%c0_6, %c0_7] : memref<32x4xf32, #tpu.memory_space<vmem>>, vector<32x4xf32>
    %c0_8 = arith.constant 0 : index
    %c0_9 = arith.constant 0 : index
    %8 = vector.load %arg2[%c0_8, %c0_9] : memref<4x128xf32, #tpu.memory_space<vmem>>, vector<4x128xf32>
    %cst_10 = arith.constant dense<0.000000e+00> : vector<32x128xf32>
    %9 = tpu.matmul %7, %8, %cst_10 {dimension_numbers = #tpu.dot_dimension_numbers<[1], [0], [0], [1], [0, 0, 1, 1], [], []>} : vector<32x4xf32>, vector<4x128xf32>, vector<32x128xf32> -> vector<32x128xf32>
    %10 = arith.addf %6, %9 : vector<32x128xf32>
    %c0_11 = arith.constant 0 : index
    %c0_12 = arith.constant 0 : index
    %11 = vector.load %arg6[%c0_11, %c0_12] : memref<32x1xf32, #tpu.memory_space<vmem>>, vector<32x1xf32>
    %12 = vector.broadcast %11 : vector<32x1xf32> to vector<32x128xf32>
    %13 = arith.addf %10, %12 : vector<32x128xf32>
    %cst_13 = arith.constant 2.000000e-01 : f32
    %14 = vector.broadcast %cst_13 : f32 to vector<32x128xf32>
    %15 = arith.mulf %14, %13 : vector<32x128xf32>
    %16 = arith.maximumf %13, %15 : vector<32x128xf32>
    %c0_14 = arith.constant 0 : index
    %c0_15 = arith.constant 0 : index
    %17 = vector.load %arg7[%c0_14, %c0_15] : memref<1x32xf32, #tpu.memory_space<vmem>>, vector<1x32xf32>
    %cst_16 = arith.constant dense<0.000000e+00> : vector<1x128xf32>
    %18 = tpu.matmul %17, %16, %cst_16 {dimension_numbers = #tpu.dot_dimension_numbers<[1], [0], [0], [1], [0, 0, 1, 1], [], []>} : vector<1x32xf32>, vector<32x128xf32>, vector<1x128xf32> -> vector<1x128xf32>
    %c0_17 = arith.constant 0 : index
    %c0_18 = arith.constant 0 : index
    %19 = vector.load %arg8[%c0_17, %c0_18] : memref<1x1xf32, #tpu.memory_space<vmem>>, vector<1x1xf32>
    %20 = vector.broadcast %19 : vector<1x1xf32> to vector<1x128xf32>
    %21 = arith.addf %18, %20 : vector<1x128xf32>
    %22 = arith.negf %21 : vector<1x128xf32>
    %23 = math.exp %22 : vector<1x128xf32>
    %cst_19 = arith.constant 1.000000e+00 : f32
    %24 = vector.broadcast %cst_19 : f32 to vector<1x128xf32>
    %25 = arith.addf %24, %23 : vector<1x128xf32>
    %26 = arith.divf %24, %25 : vector<1x128xf32>
    %c0_20 = arith.constant 0 : index
    %c0_21 = arith.constant 0 : index
    %27 = vector.load %arg9[%c0_20, %c0_21] : memref<1x128xf32, #tpu.memory_space<vmem>>, vector<1x128xf32>
    tpu.vector_store %arg9[%c0_20, %c0_21], %26 {strides = array<i32>} : memref<1x128xf32, #tpu.memory_space<vmem>>, vector<1x128xf32>,
    return
  }
  func.func @transform_0(%arg0: i32) -> (i32, i32) {
    %c0_i32 = arith.constant 0 : i32
    %c0_i32_0 = arith.constant 0 : i32
    return %c0_i32, %arg0 : i32, i32
  }
  func.func @transform_1(%arg0: i32) -> (i32, i32) {
    %c0_i32 = arith.constant 0 : i32
    %c0_i32_0 = arith.constant 0 : i32
    return %c0_i32, %arg0 : i32, i32
  }
  func.func @transform_2(%arg0: i32) -> (i32, i32) {
    %c0_i32 = arith.constant 0 : i32
    %c0_i32_0 = arith.constant 0 : i32
    return %c0_i32, %arg0 : i32, i32
  }
  func.func @transform_3(%arg0: i32) -> (i32, i32) {
    %c0_i32 = arith.constant 0 : i32
    %c0_i32_0 = arith.constant 0 : i32
    %c0_i32_1 = arith.constant 0 : i32
    return %c0_i32, %c0_i32_0 : i32, i32
  }
  func.func @transform_4(%arg0: i32) -> (i32, i32) {
    %c0_i32 = arith.constant 0 : i32
    %c0_i32_0 = arith.constant 0 : i32
    %c0_i32_1 = arith.constant 0 : i32
    return %c0_i32, %c0_i32_0 : i32, i32
  }
  func.func @transform_5(%arg0: i32) -> (i32, i32) {
    %c0_i32 = arith.constant 0 : i32
    %c0_i32_0 = arith.constant 0 : i32
    %c0_i32_1 = arith.constant 0 : i32
    return %c0_i32, %c0_i32_0 : i32, i32
  }
  func.func @transform_6(%arg0: i32) -> (i32, i32) {
    %c0_i32 = arith.constant 0 : i32
    %c0_i32_0 = arith.constant 0 : i32
    %c0_i32_1 = arith.constant 0 : i32
    return %c0_i32, %c0_i32_0 : i32, i32
  }
  func.func @transform_7(%arg0: i32) -> (i32, i32) {
    %c0_i32 = arith.constant 0 : i32
    %c0_i32_0 = arith.constant 0 : i32
    %c0_i32_1 = arith.constant 0 : i32
    return %c0_i32, %c0_i32_0 : i32, i32
  }
  func.func @transform_8(%arg0: i32) -> (i32, i32) {
    %c0_i32 = arith.constant 0 : i32
    %c0_i32_0 = arith.constant 0 : i32
    return %c0_i32, %arg0 : i32, i32
  }
}

</mosaic_0001>

<bundles_post_ra>
// kernel: tpu_custom_call.1
= control target key start
LH: loop header
LB: loop body
LE: loop exit
PB: predicated region body
PF: predicated region fallthrough
CT: control target
= control target key end

     0   :  { %s1291_s0 = inlined_call_operand.vmem [shape: f32[16,384], index: 0, kind: input, shape index: {}]   ;;  %s1292_s1 = inlined_call_operand.vmem [shape: f32[4,384], index: 1, kind: input, shape index: {}]   ;;  %s1293_s2 = inlined_call_operand.vmem [shape: f32[16,384], index: 2, kind: input, shape index: {}]   ;;  %s1294_s3 = inlined_call_operand.vmem [shape: f32[32,16], index: 3, kind: input, shape index: {}]   ;;  %s1295_s4 = inlined_call_operand.vmem [shape: f32[32,4], index: 4, kind: input, shape index: {}]   ;;  %s1296_s5 = inlined_call_operand.vmem [shape: f32[32,1], index: 5, kind: input, shape index: {}]   ;;  %s1297_s6 = inlined_call_operand.vmem [shape: f32[1,32], index: 6, kind: input, shape index: {}]   ;;  %s1298_s7 = inlined_call_operand.<no memory space> [shape: f32[1,1], index: 7, kind: input, shape index: {}]   ;;  %s1299_s8 = inlined_call_operand.hbm [shape: f32[1,384], index: 8, kind: output, shape index: {}]  }
   0x1   :  { %v13_v0 = vstv %s1298_s7 }
   0x2   :  { %14 = vst [vmem:[#allocation2] sm:$0x1] %v13_v0 }
   0x3   :  { %15 = vsyncpa [#allocation6], 0 }
   0x4   :  { %17 = vsyncpa [#allocation6 + $0x1], 0  ;;  %s1117_s29 = smov 0   ;;  %s1119_s30 = smov 0  }
   0x5   :  { %s1121_s9 = smov 0   ;;  %s1123_s10 = smov 0  }
   0x6 LB: > { %s1138_s7 = sadd.s32 4294967295, %s1062_s10   ;;  %s867_s11 = sadd.s32 4294967294, %s1062_s10   ;;  %s1062_s10 = sphi %s1123_s10, %s1306_s10   ;;  %s1058_s9 = sphi %s1121_s9, %s1305_s9   ;;  %s1054_s30 = sphi %s1119_s30, %s1304_s30   ;;  %s1050_s29 = sphi %s1117_s29, %s1303_s29  }
   0x7   : > { %s1142_s12 = sadd.s32 1, %s1062_s10   ;;  %s30_s13 = sadd.s32 1, %s1058_s9 }
   0x8   : > { %s27_s14 = ssub.s32 %s1062_s10, %s1142_s12  ;;  %p37_p0 = scmp.ne.s32.totalorder %s1058_s9, %s1054_s30 }
   0x9   : > { %p28_p1 = scmp.eq.s32.totalorder %s27_s14, 0  ;;  %p38_p2 = scmp.eq.s32.totalorder %s1062_s10, 0 }
   0xa   : > { %p224_p3 = scmp.eq.s32.totalorder %s1138_s7, 2  ;;  %p229_p4 = scmp.ne.s32.totalorder %s1054_s30, %s1050_s29 }
   0xb   : > { %s1154_s15 = scalar_select %p28_p1, %s1058_s9, %s30_s13  }
   0xc   : > { %p1156_p5 = por %p38_p2, %p37_p0  ;;  %p1160_p6 = por %p224_p3, %p37_p0 }
   0xd   : > { %p230_p7 = scmp.eq.s32.totalorder %s867_s11, 2  ;;  %p869_p9 = scmp.ge.s32.totalorder %s1062_s10, 3 }
   0xf   : > { %p1164_p8 = por %p230_p7, %p229_p4  ;;  %261 = sbr.rel (%p869_p9) target bundleno = 36 (0x24), region = 36 }
  0x16   : > { %264 = sbr.rel (!%p1156_p5) target bundleno = 29 (0x1d), region = 40  ;;  %s266_s19 = sand.u32 (%p1156_p5), 1, %s1058_s9  }
  0x17   : > { %s871_s20 = sshll.u32 (%p1156_p5), %s1062_s10, 3  ;;  %s870_s21 = sshll.u32 (%p1156_p5), %s266_s19, 4 }
  0x18   : > { %s270_s24 = scalar_lea.vmem (%p1156_p5), %s1291_s0, %s871_s20  ;;  %s268_s25 = scalar_lea.vmem (%p1156_p5), [#allocation3], %s870_s21 }
  0x19   : > { %v300_v1 = vld [vmem:[%s270_s24] sm:$0xff] (%p1156_p5)  ;;  %v302_v2 = vld [vmem:[%s270_s24 + $0x18] sm:$0xff] (%p1156_p5) }
  0x1a   : > { %301 = vst [vmem:[%s268_s25] sm:$0xff] (%p1156_p5), %v300_v1  ;;  %303 = vst [vmem:[%s268_s25 + $0x8] sm:$0xff] (%p1156_p5), %v302_v2 }
  0x1d PF: > { %316 = sbr.rel (!%p1156_p5) target bundleno = 36 (0x24), region = 82  ;;  %s318_s26 = sand.u32 (%p1156_p5), 1, %s1058_s9  }
  0x1e   : > { %s873_s27 = sshll.u32 (%p1156_p5), %s1062_s10, 3  ;;  %s872_s28 = sshll.u32 (%p1156_p5), %s318_s26, 4 }
  0x1f   : > { %s322_s14 = scalar_lea.vmem (%p1156_p5), %s1293_s2, %s873_s27  ;;  %s320_s19 = scalar_lea.vmem (%p1156_p5), [#allocation4], %s872_s28 }
  0x20   : > { %v352_v3 = vld [vmem:[%s322_s14] sm:$0xff] (%p1156_p5)  ;;  %v354_v4 = vld [vmem:[%s322_s14 + $0x18] sm:$0xff] (%p1156_p5) }
  0x21   : > { %353 = vst [vmem:[%s320_s19] sm:$0xff] (%p1156_p5), %v352_v3  ;;  %355 = vst [vmem:[%s320_s19 + $0x8] sm:$0xff] (%p1156_p5), %v354_v4 }
  0x24 PF: > { %p874_p10 = scmp.ge.s32.totalorder %s1062_s10, 1  ;;  %p360_p11 = scmp.lt.s32.totalorder %s1062_s10, 4 }
  0x26   : > { %p361_p12 = pnand %p874_p10, %p360_p11 }
  0x27   : > { %s1186_s16 = sand.u32 (!%p361_p12), 1, %s1054_s30   ;;  %p414_p13 = scmp.lt.s32.totalorder (!%p361_p12), %s1138_s7, 2  ;;  %v430_v5 = vld [vmem:[%s1295_s4] sm:$0xff] (!%p361_p12)  ;;  %vm435_vm0 = vcmask (!%p361_p12), 31744   ;;  %vm537_vm1 = vcmask (!%p361_p12), 130048   ;;  %v1064_v7 = vmov (!%p361_p12), 0   ;;  %v678_v62 = vlaneseq (!%p361_p12) }
  0x28   : > { %364 = sbr.rel (%p361_p12) target bundleno = 538 (0x21a), region = 120  ;;  %s875_s22 = sshll.u32 (!%p361_p12), %s1186_s16, 4  ;;  %910 = vmatprep.mubr.msk.f32.mxu1 (!%p361_p12), %vm435_vm0, %v430_v5  ;;  %v426_v6 = vld [vmem:[%s1294_s3] sm:$0xff] (!%p361_p12)  ;;  %994 = vset.pattern.permute.xlu0 (!%p361_p12), %v1064_v7  ;;  %vm448_vm2 = vcmask (!%p361_p12), 1043456   ;;  %v637_v15 = vld [vmem:[%s1296_s5 + $0x10] sm:$0xff] (!%p361_p12)  ;;  %v636_v17 = vld [vmem:[%s1296_s5 + $0x8] sm:$0xff] (!%p361_p12) }
  0x29   : > { %920 = vmatprep.mubr.msk.f32.mxu0 (!%p361_p12), %vm537_vm1, %v426_v6  ;;  %s369_s25 = scalar_lea.vmem (!%p361_p12), [#allocation3], %s875_s22  ;;  %s376_s26 = scalar_lea.vmem (!%p361_p12), [#allocation4], %s875_s22  ;;  %995 = vset.pattern.permute.xlu1 (!%p361_p12), %v1064_v7  ;;  %v635_v13 = vld [vmem:[%s1296_s5] sm:$0xff] (!%p361_p12)  ;;  %v431_v20 = vld [vmem:[%s1295_s4 + $0x8] sm:$0xff] (!%p361_p12)  ;;  %v638_v21 = vld [vmem:[%s1296_s5 + $0x18] sm:$0xff] (!%p361_p12)  ;;  %v1065_v29 = vmov (!%p361_p12), 0.0|0.0  }
  0x2a   : > { %v418_v8 = vld [vmem:[%s369_s25] sm:$0xff] (!%p361_p12)  ;;  %v419_v10 = vld [vmem:[%s369_s25 + $0x8] sm:$0xff] (!%p361_p12)  ;;  %641 = vperm.xlu0 (!%p361_p12), %994, %v635_v13   ;;  %651 = vperm.xlu1 (!%p361_p12), %995, %v637_v15   ;;  %vm1066_vm3 = vmmov (!%p361_p12), 0   ;;  %v1067_v30 = vmov (!%p361_p12), 0.0   ;;  %vm682_vm4 = vcmask (!%p361_p12), 261120   ;;  %v679_v63 = vshrl.u32 (!%p361_p12), %v678_v62, 7 }
  0x2b   : > { %v420_v9 = vld [vmem:[%s376_s26] sm:$0xff] (!%p361_p12)  ;;  %v421_v11 = vld [vmem:[%s376_s26 + $0x8] sm:$0xff] (!%p361_p12)  ;;  %s889_s28 = sshll.u32 (!%p361_p12), %s1138_s7, 4  ;;  %s413_s11 = scalar_lea.vmem (!%p361_p12), [#allocation5], %s1186_s16 }
  0x2c   : > { %v422_v12 = vmul.f32 (!%p361_p12), 0.05, %v420_v9  ;;  %v423_v14 = vmul.f32 (!%p361_p12), 0.05, %v421_v11  ;;  %v432_v22 = vld [vmem:[%s1295_s4 + $0x10] sm:$0xff] (!%p361_p12)  ;;  %v433_v25 = vld [vmem:[%s1295_s4 + $0x18] sm:$0xff] (!%p361_p12)  ;;  %s1248_s20 = scalar_lea.hbm (!%p361_p12), %s1299_s8, %s889_s28 }
  0x2d   : > { %v672_v24 = vld [vmem:[#allocation2] sm:$0x1] (!%p361_p12)  ;;  %v427_v26 = vld [vmem:[%s1294_s3 + $0x8] sm:$0xff] (!%p361_p12)  ;;  %v428_v27 = vld [vmem:[%s1294_s3 + $0x10] sm:$0xff] (!%p361_p12)  ;;  %v680_v0 = vsub.s32 (!%p361_p12), 0, %v679_v63  ;;  %s776_s14 = sshll.u32 (!%p361_p12), %s413_s11, 4  ;;  %s1250_s14 = int_to_ptr.vmem [resolvable:$true] %s776_s14 }
  0x2e   : > { %v424_v16 = vadd.f32 (!%p361_p12), %v422_v12, %v418_v8  ;;  %v425_v18 = vadd.f32 (!%p361_p12), %v423_v14, %v419_v10  ;;  %646 = vperm.xlu0 (!%p361_p12), %994, %v636_v17   ;;  %656 = vperm.xlu1 (!%p361_p12), %995, %v638_v21   ;;  %v429_v28 = vld [vmem:[%s1294_s3 + $0x18] sm:$0xff] (!%p361_p12)  ;;  %v671_v61 = vld [vmem:[%s1297_s6] sm:$0x1] (!%p361_p12)  ;;  %s764_s21 = scalar_lea.sflag (!%p361_p12), [#allocation6], %s1186_s16 }
  0x2f   : > { %s415_s27 = scalar_select %p414_p13, %s1138_s7, 2 }
  0x30   : > { %v937_v23 = vpack.c.bf16 %v425_v18, %v424_v16  ;;  %s1068_s7 = smov [#allocation5]  }
  0x31   : > { %s877_s13 = sshll.u32 %s415_s27, 2  ;;  %s1004_s23 = sshll.u32 %s1068_s7, 4  ;;  %s1005_s23 = int_to_ptr.vmem [resolvable:$false] %s1004_s23 }
  0x32   : > { %s417_s22 = scalar_lea.vmem %s1292_s1, %s877_s13  ;;  %938 = vmatprep.subr.bf16.mxu0 %v937_v23  ;;  %675 = vperm.xlu0 %994, %v672_v24   ;;  %s1006_s24 = scalar_lea.vmem %s1005_s23, 32 }
  0x33   : > { %v434_v19 = vld [vmem:[%s417_s22] sm:$0xf]  ;;  %940 = vmatpush3.bf16.msra.mxu0 %v937_v23  ;;  %s1000_s22 = scalar_lea.vmem %s1250_s14, 16  ;;  %p1007_p3 = scmp.lt.s32.totalorder %s1250_s14, %s1005_s23 }
  0x34   : > { %908 = vmatprep.subr.msk.mxu1 %vm448_vm2, %v434_v19  ;;  %p1001_p0 = scmp.ne.s32.totalorder %s1250_s14, %s1000_s22  ;;  %p1008_p4 = scmp.lt.s32.totalorder %s1006_s24, %s1000_s22 }
  0x35   : > { %909 = vmatpush3.msk.msra.mxu1 %vm448_vm2, %v434_v19 }
  0x36   : > { %911 = vmatmul.mubr.msk.f32.vlgmr.msra.gmra.mrb[0].mxu1 %vm435_vm0, %v431_v20  ;;  %921 = vmatmul.mubr.msk.f32.vlgmr.msra.gmra.mrb[0].mxu0 %vm537_vm1, %v427_v26  ;;  %p1002_p1 = pnand %p1001_p0, %p1160_p6  ;;  %p1009_p5 = por %p1008_p4, %p1007_p3 }
  0x37   : > { %913 = vmatprep.mubr.msk.f32.mxu1 %vm435_vm0, %v432_v22  ;;  %923 = vmatprep.mubr.msk.f32.mxu0 %vm537_vm1, %v428_v27 }
  0x38   : > { %941 = vmatprep.subr.bf16.mxu1 %v1065_v29  ;;  %p1003_p2 = pneg %p1002_p1 }
  0x3a   : > { %914 = vmatmul.mubr.msk.f32.gmra.mrb[2].mxu1 %vm435_vm0, %v433_v25  ;;  %924 = vmatmul.mubr.msk.f32.gmra.mrb[2].mxu0 %vm537_vm1, %v429_v28  ;;  %p1010_p7 = pnand %p1009_p5, %p1003_p2 }
  0x3b   : > { %934 = vmatprep.mubr.msk.f32.mxu1 %vm1066_vm3, %v1067_v30 }
  0xa9   : > { %v642_v32 = vpop.permute.xlu0 %641  ;;  %v652_v34 = vpop.permute.xlu1 %651 }
  0xad   : > { %v647_v40 = vpop.permute.xlu0 %646  ;;  %v657_v49 = vpop.permute.xlu1 %656 }
  0xb1   : > { %v676_v1 = vpop.permute.xlu0 %675 }
  0xb2   : > { %v681_v2 = vrot.slane %v676_v1, %v680_v0 }
 0x109   : > { %v912_v31 = vpop.f32.mrb[0].mxu1  ;;  %v922_v36 = vpop.f32.mrb[0].mxu0 }
 0x10a   : > { %v518_v33 = vpop.f32.mrb[1].mxu1  ;;  %v622_v38 = vadd.f32 %v922_v36, %v912_v31  ;;  %v616_v39 = vpop.f32.mrb[1].mxu0 }
 0x10b   : > { %v617_v41 = vadd.f32 %v616_v39, %v518_v33 }
 0x10c   : > { %v660_v42 = vadd.f32 %v647_v40, %v622_v38 }
 0x10d   : > { %v915_v35 = vpop.f32.mrb[2].mxu1  ;;  %v659_v43 = vadd.f32 %v642_v32, %v617_v41  ;;  %v925_v44 = vpop.f32.mrb[2].mxu0 }
 0x10e   : > { %v528_v37 = vpop.f32.mrb[3].mxu1  ;;  %v664_v45 = vmul.f32 0.2, %v660_v42  ;;  %v632_v46 = vadd.f32 %v925_v44, %v915_v35  ;;  %v626_v47 = vpop.f32.mrb[3].mxu0 }
 0x10f   : > { %v663_v48 = vmul.f32 0.2, %v659_v43  ;;  %v627_v50 = vadd.f32 %v626_v47, %v528_v37 }
 0x110   : > { %v668_v51 = vmax.f32 %v660_v42, %v664_v45  ;;  %v662_v52 = vadd.f32 %v657_v49, %v632_v46 }
 0x111   : > { %v667_v53 = vmax.f32 %v659_v43, %v663_v48  ;;  %v661_v54 = vadd.f32 %v652_v34, %v627_v50 }
 0x112   : > { %v666_v55 = vmul.f32 0.2, %v662_v52 }
 0x113   : > { %v942_v56 = vpack.c.bf16 %v668_v51, %v667_v53  ;;  %v665_v57 = vmul.f32 0.2, %v661_v54 }
 0x114   : > { %v670_v58 = vmax.f32 %v662_v52, %v666_v55 }
 0x115   : > { %v669_v59 = vmax.f32 %v661_v54, %v665_v57  ;;  %943 = vmatpush3.bf16.msra.mxu1 %v942_v56 }
 0x116   : > { %944 = vmatprep.subr.bf16.mxu1 %v1065_v29 }
 0x117   : > { %v945_v60 = vpack.c.bf16 %v670_v58, %v669_v59 }
 0x119   : > { %946 = vmatpush3.bf16.msra.mxu1 %v945_v60 }
 0x11c   : > { %935 = vmatmul.mubr.msk.f32.vlgmr.msra.gmra.mrb[4].mxu1 %vm682_vm4, %v671_v61 }
 0x1ef   : > { %v752_v3 = vpop.f32.mrb[4].mxu1 }
 0x1f0   : > { %v753_v4 = vadd.f32 %v752_v3, %v681_v2  ;;  %v936_v5 = vpop.f32.mrb[5].mxu1 }
 0x1f2   : > { %v888_v6 = vmul.f32 -1.442695, %v753_v4 }
 0x1f4   : > { %996 = vpow2.f32 %v888_v6 }
 0x1fe   : > { %v997_v7 = vpop.eup %996 }
 0x1ff   : > { %v759_v8 = vadd.f32 1.0, %v997_v7 }
 0x201   : > { %998 = vrcp.f32 %v759_v8 }
 0x20b   : > { %v999_v9 = vpop.eup %998 }
 0x20c   : > { %762 = vst [vmem:[%s413_s11] sm:$0x1] %v999_v9 }
 0x20d   : > { %1013 = shalt.err (!%p1010_p7)
}
 0x20e   : > { %s1014_s16 = scalar_lea.hbm %s1248_s20, 16  ;;  %s1018_s27 = scalar_lea.hbm %s1299_s8, 48 }
 0x20f   : > { %p1015_p9 = scmp.ne.s32.totalorder %s1248_s20, %s1014_s16  ;;  %p1019_p12 = scmp.lt.u32.totalorder %s1248_s20, %s1299_s8 }
 0x210   : > { %p1020_p13 = scmp.lt.u32.totalorder %s1018_s27, %s1014_s16  ;;  %p1022_p1 = scmp.lt.u32.totalorder %s1014_s16, %s1248_s20 }
 0x211   : > { %p1016_p10 = pnand %p1015_p9, %p1160_p6 }
 0x212   : > { %p1021_p0 = por %p1020_p13, %p1019_p12 }
 0x213   : > { %p1017_p11 = pneg %p1016_p10 }
 0x214   : > { %p1023_p2 = por %p1022_p1, %p1021_p0 }
 0x216   : > { %p1024_p3 = pnand %p1023_p2, %p1017_p11 }
 0x218   : > { %1027 = shalt.err (!%p1024_p3)
}
 0x219   : > { %951 = dma.vmem_to_hbm [thread:$0]  (%p1160_p6), %s1250_s14, 16, %s1248_s20, %s764_s21  }
 0x21a PF: > { %p957_p4 = scmp.ge.s32.totalorder %s1062_s10, 2  ;;  %s788_s13 = sand.u32 1, %s1050_s29  }
 0x21b   : > { %s789_s19 = scalar_lea.sflag [#allocation6], %s788_s13 }
 0x21c   : > { %p954_p5 = pnand %p957_p4, %p1164_p8 }
 0x21e   : > { %1045 = dma.done.wait (!%p954_p5), %s789_s19, 16  }
 0x21f   : > { %1047 = vsyncadd (!%p954_p5), %s789_s19, 4294967280  ;;  %p20_p7 = scmp.ge.s32.totalorder %s1142_s12, 5   ;;  %s1303_s29 = smov %s1054_s30 }
 0x220   : > { %s1304_s30 = smov %s1058_s9  ;;  %s1305_s9 = smov %s1154_s15 }
 0x221   : > { %s1306_s10 = smov %s1142_s12  ;;  %22 = sbr.rel (!%p20_p7) target bundleno = 6 (0x6), region = 179 }
 0x228   :  { %793 = vsyncpa [#allocation6], 1 }
 0x229   :  { %795 = vsyncpa [#allocation6 + $0x1], 1 }

</bundles_post_ra>
